<compile_context>
chip_gen: v7x
topology: tpu7x:2x2x1
jax: 0.10.0
libtpu: 0.0.40
codegen_flags: <defaults>
</compile_context>

<pallas_src>
import functools

import jax
import jax.numpy as jnp
from jax import lax
from jax.experimental import pallas as pl
from jax.experimental.pallas import tpu as pltpu

NEG_SLOPE = 0.01     # F.leaky_relu default
BN_EPS = 1e-5        # nn.BatchNorm1d default
LANES = 128

# ---------------- packed parameter slab (P_ROWS, 128) ----------------
R_WAUG = 0           # rows [0,128):   W_aug: cols 0..63 = Wfc^T, col 64 = Wfc^T @ a_dst
R_LLW = 128          # rows [128,256): ll.weight^T zero-padded to (128,128)
R_VEC = 256          # rows [256,264): small vectors (one per row)
V_WSRC, V_BNG, V_BNB, V_LLB, V_BN1G, V_BN1B = 0, 1, 2, 3, 4, 5
P_ROWS = R_VEC + 8

# ---------------- packed input slab (384 + 2*pad_b, 128) ----------------
R_X = 0              # rows [0,128):   stacked node features (graph2 rows offset by N), 0-padded
R_XT = 128           # rows [128,256): transpose of the X region (built host-side, free)
R_ADJT = 256         # rows [256,384): adj_T[dst,src], block-diagonal over the two graphs
R_SEL = 384          # rows [384,384+2*pad_b): one-hot drug1 selectors, branch k at k*pad_b


def _round_up(x, m):
    return ((x + m - 1) // m) * m


# ------------------------------ fused kernel ------------------------------
def _make_kernel(b, pad_b):
    def kernel(in_ref, p_ref, o_ref):
        x = in_ref[R_X:R_X + LANES, :]            # (128,128) stacked node feats (zero padded)
        x_t = in_ref[R_XT:R_XT + LANES, :]        # (128,128) its transpose
        adj_t = in_ref[R_ADJT:R_ADJT + LANES, :]  # (128,128) adj_T[dst,src], block-diagonal
        sel = in_ref[R_SEL:R_SEL + 2 * pad_b, :]  # (2*pad_b,128) one-hot drug1 selectors

        w_aug = p_ref[R_WAUG:R_WAUG + LANES, :]   # (128,128)
        ll_w = p_ref[R_LLW:R_LLW + LANES, :]      # (128,128)
        vec = p_ref[R_VEC:R_VEC + 8, :]           # (8,128)

        # ---- GATLayer (both graphs at once; padding lanes/rows are exact zeros) ----
        zw = jnp.dot(x, w_aug, preferred_element_type=jnp.float32)        # cols0-63=z, col64=a_dst.z
        s_row = jnp.dot(vec[V_WSRC:V_WSRC + 1, :], x_t,
                        preferred_element_type=jnp.float32)               # (1,128): a_src.z_i per src i
        e = zw[:, 64:65] + s_row                                          # e[dst, src]
        e = jnp.where(e > 0, e, NEG_SLOPE * e)                            # leaky_relu
        alpha = jax.nn.sigmoid(e) * adj_t                                 # mask non-edges & padding
        h = jnp.dot(alpha, zw, preferred_element_type=jnp.float32)        # h[j] = sum_i alpha_ij z_i
        drug = jnp.dot(sel, h, preferred_element_type=jnp.float32)        # (2*pad_b,128) gathered drug1

        bn_g = vec[V_BNG:V_BNG + 1, :]
        bn_b = vec[V_BNB:V_BNB + 1, :]
        ll_b = vec[V_LLB:V_LLB + 1, :]
        bn1_g = vec[V_BN1G:V_BN1G + 1, :]
        bn1_b = vec[V_BN1B:V_BN1B + 1, :]
        valid = lax.broadcasted_iota(jnp.int32, (pad_b, LANES), 0) < b

        def tail(d):  # (pad_b,128); rows b.. are zero-selector rows, masked out at the end
            st = d[:b]
            mu = jnp.mean(st, axis=0, keepdims=True)
            var = jnp.mean((st - mu) ** 2, axis=0, keepdims=True)
            # bn gamma is 0 beyond col 63 -> the garbage lane (col 64 of h) is zeroed here.
            t = jnp.maximum((d - mu) * lax.rsqrt(var + BN_EPS) * bn_g + bn_b, 0.0)
            y = jnp.dot(t, ll_w, preferred_element_type=jnp.float32) + ll_b
            st1 = y[:b]
            mu1 = jnp.mean(st1, axis=0, keepdims=True)
            var1 = jnp.mean((st1 - mu1) ** 2, axis=0, keepdims=True)
            z = jnp.maximum((y - mu1) * lax.rsqrt(var1 + BN_EPS) * bn1_g + bn1_b, 0.0)
            return jnp.where(valid, z, 0.0)

        # full aligned (pad_b,128) tile stores (unmasked)
        o_ref[0:pad_b, :] = tail(drug[0:pad_b, :])
        o_ref[pad_b:2 * pad_b, :] = tail(drug[pad_b:2 * pad_b, :])

    return kernel


def _fused_call(in_slab, p_slab, b, pad_b):
    in_rows = in_slab.shape[0]
    return pl.pallas_call(
        _make_kernel(b, pad_b),
        out_shape=jax.ShapeDtypeStruct((2 * pad_b, LANES), jnp.float32),
        grid=(1,),
        in_specs=[
            pl.BlockSpec((in_rows, LANES), lambda i: (0, 0)),
            pl.BlockSpec((P_ROWS, LANES), lambda i: (0, 0)),
        ],
        out_specs=pl.BlockSpec((2 * pad_b, LANES), lambda i: (0, 0)),
        compiler_params=pltpu.CompilerParams(dimension_semantics=("arbitrary",)),
    )(in_slab, p_slab)


# ------------------------------ glue / model ------------------------------
def xavier_uniform(key, shape):
    fan_out, fan_in = shape
    limit = (6.0 / (fan_in + fan_out)) ** 0.5
    return jax.random.uniform(key, shape, jnp.float32, -limit, limit)


def init_params(key, f_node=13):
    ks = jax.random.split(key, 3)
    wfc = xavier_uniform(ks[0], (64, f_node))      # GATLayer.fc.weight (64,13), no bias
    attn = xavier_uniform(ks[1], (1, 128))         # GATLayer.attn_fc.weight (1,128), no bias
    ll_w = xavier_uniform(ks[2], (32, 64))         # GAT_L.ll.weight
    ll_b = jnp.zeros((32,), jnp.float32)           # TODO(synk): torch default bias init is U(+-1/sqrt(64))
    a_src, a_dst = attn[0, :64], attn[0, 64:]

    p = jnp.zeros((P_ROWS, LANES), jnp.float32)
    p = p.at[R_WAUG:R_WAUG + f_node, 0:64].set(wfc.T)
    p = p.at[R_WAUG:R_WAUG + f_node, 64].set(wfc.T @ a_dst)   # folds dst attention projection
    p = p.at[R_LLW:R_LLW + 64, 0:32].set(ll_w.T)
    p = p.at[R_VEC + V_WSRC, 0:f_node].set(wfc.T @ a_src)     # folds src attention projection
    p = p.at[R_VEC + V_BNG, 0:64].set(1.0)                    # bn.gamma (beta row stays 0)
    p = p.at[R_VEC + V_LLB, 0:32].set(ll_b)
    p = p.at[R_VEC + V_BN1G, 0:32].set(1.0)                   # bn1.gamma (beta row stays 0)
    return {"slab": p, "wfc": wfc, "a_src": a_src, "a_dst": a_dst, "ll_w": ll_w, "ll_b": ll_b}


def _sel_rows(ids, b, lane_offset):
    """(b,128) one-hot rows selecting the first b drug1 (id==1) nodes, lanes offset by lane_offset.
    If fewer than b drug1 nodes exist, extra rows are all-zero (-> zero embedding).
    TODO(synk): those zero rows enter the BN batch statistics, unlike torch's dynamic batch size."""
    n = ids.shape[0]
    is_drug = ids == 1
    rank = jnp.cumsum(is_drug.astype(jnp.int32)) - 1
    rows = (is_drug[None, :] & (rank[None, :] == jnp.arange(b)[:, None])).astype(jnp.float32)
    return jnp.zeros((b, LANES), jnp.float32).at[:, lane_offset:lane_offset + n].set(rows)


def build_input_slab(graph1, graph2, b, pad_b):
    x1, adj1, ids1 = graph1
    x2, adj2, ids2 = graph2
    n, f = x1.shape
    assert 2 * n <= LANES and f <= LANES and 2 * b <= 2 * pad_b

    x_pad = jnp.zeros((LANES, LANES), jnp.float32)
    x_pad = x_pad.at[0:n, 0:f].set(x1.astype(jnp.float32))
    x_pad = x_pad.at[n:2 * n, 0:f].set(x2.astype(jnp.float32))

    adj_t = jnp.zeros((LANES, LANES), jnp.float32)
    adj_t = adj_t.at[0:n, 0:n].set(adj1.astype(jnp.float32).T)          # adj_T[dst,src]
    adj_t = adj_t.at[n:2 * n, n:2 * n].set(adj2.astype(jnp.float32).T)  # block-diagonal

    sel = jnp.zeros((2 * pad_b, LANES), jnp.float32)
    sel = sel.at[0:b, :].set(_sel_rows(ids1, b, 0))
    sel = sel.at[pad_b:pad_b + b, :].set(_sel_rows(ids2, b, n))

    return jnp.concatenate([x_pad, x_pad.T, adj_t, sel], axis=0)        # (384 + 2*pad_b, 128)


@functools.partial(jax.jit, static_argnums=(3,))
def siamese_gcn_train_forward(graph1, graph2, p_slab, num_drug1):
    """graphX = (node_feat (N,13), adj (N,N) with adj[src,dst]=1, ids (N,)).
    Returns (emb1, emb2), each (num_drug1, 32).
    TODO(synk): num_drug1 (torch: dynamic nonzero count) must be static; BatchNorm running
    stats are not updated (training-mode batch statistics only)."""
    b = num_drug1
    pad_b = _round_up(b, 8)
    in_slab = build_input_slab(graph1, graph2, b, pad_b)
    out = _fused_call(in_slab, p_slab["slab"] if isinstance(p_slab, dict) else p_slab, b, pad_b)
    return out[0:b, 0:32], out[pad_b:pad_b + b, 0:32]


# ------------------------------ pure-JAX reference ------------------------------
def reference_forward_once(x, adj, ids, params, b):
    wfc, a_src, a_dst = params["wfc"], params["a_src"], params["a_dst"]
    ll_w, ll_b = params["ll_w"], params["ll_b"]
    z = x @ wfc.T
    s = z @ a_src
    d = z @ a_dst
    e = s[:, None] + d[None, :]                       # e[src, dst]
    e = jnp.where(e > 0, e, NEG_SLOPE * e)
    alpha = jax.nn.sigmoid(e) * adj
    h = alpha.T @ z                                   # h[dst]
    is_drug = ids == 1
    rank = jnp.cumsum(is_drug.astype(jnp.int32)) - 1
    sel = (is_drug[None, :] & (rank[None, :] == jnp.arange(b)[:, None])).astype(jnp.float32)
    drug = sel @ h
    mu, var = drug.mean(0), ((drug - drug.mean(0)) ** 2).mean(0)
    t = jnp.maximum((drug - mu) / jnp.sqrt(var + BN_EPS), 0.0)
    y = t @ ll_w.T + ll_b
    mu1, var1 = y.mean(0), ((y - y.mean(0)) ** 2).mean(0)
    return jnp.maximum((y - mu1) / jnp.sqrt(var1 + BN_EPS), 0.0)


if __name__ == "__main__":
    N, F_NODE, B = 16, 13, 4
    key = jax.random.PRNGKey(0)
    k1, k2, k3, k4, kp = jax.random.split(key, 5)

    def make_graph(kx, ka):
        x = jax.random.normal(kx, (N, F_NODE), jnp.float32)              # graph.ndata['feat']
        adj = (jax.random.uniform(ka, (N, N)) < 0.3).astype(jnp.float32)
        adj = jnp.maximum(adj, jnp.eye(N, dtype=jnp.float32))            # self-loops
        ids = jnp.zeros((N,), jnp.int32).at[:B].set(1)                   # graph.ndata['id']
        return x, adj, ids

    g1 = make_graph(k1, k2)
    g2 = make_graph(k3, k4)
    params = init_params(kp, F_NODE)

    out1, out2 = siamese_gcn_train_forward(g1, g2, params["slab"], B)
    out1, out2 = jax.block_until_ready((out1, out2))
    assert out1.shape == (B, 32) and out1.dtype == jnp.float32
    assert out2.shape == (B, 32) and out2.dtype == jnp.float32
    assert bool(jnp.all(jnp.isfinite(out1))) and bool(jnp.all(jnp.isfinite(out2)))

    ref1 = reference_forward_once(*g1, params, B)
    ref2 = reference_forward_once(*g2, params, B)
    # loose tolerance: MXU f32 matmul pass count may differ from XLA's; structural errors
    # would produce O(1) differences.
    assert float(jnp.max(jnp.abs(out1 - ref1))) < 0.2
    assert float(jnp.max(jnp.abs(out2 - ref2))) < 0.2
    print("KERNEL_OK")
</pallas_src>

<mosaic_0001>
module attributes {stable_mosaic.version = 11 : i64} {
  func.func @kernel(%arg0: i32, %arg1: memref<400x128xf32, #tpu.memory_space<vmem>>, %arg2: memref<264x128xf32, #tpu.memory_space<vmem>>, %arg3: memref<16x128xf32, #tpu.memory_space<vmem>>) attributes {dimension_semantics = [#tpu.dimension_semantics<arbitrary>], iteration_bounds = array<i64: 1>, scalar_prefetch = 0 : i64, scratch_operands = 0 : i64, tpu.core_type = #tpu.core_type<tc>, window_params = [{pipeline_mode = #tpu.pipeline_mode<synchronous>, transform_indices = @transform_0, window_bounds = array<i64: 400, 128>}, {pipeline_mode = #tpu.pipeline_mode<synchronous>, transform_indices = @transform_1, window_bounds = array<i64: 264, 128>}, {pipeline_mode = #tpu.pipeline_mode<synchronous>, transform_indices = @transform_2, window_bounds = array<i64: 16, 128>}]} {
    %c0 = arith.constant 0 : index
    %c0_0 = arith.constant 0 : index
    %0 = vector.load %arg1[%c0, %c0_0] : memref<400x128xf32, #tpu.memory_space<vmem>>, vector<128x128xf32>
    %c128 = arith.constant 128 : index
    %c0_1 = arith.constant 0 : index
    %1 = vector.load %arg1[%c128, %c0_1] : memref<400x128xf32, #tpu.memory_space<vmem>>, vector<128x128xf32>
    %c256 = arith.constant 256 : index
    %c0_2 = arith.constant 0 : index
    %2 = vector.load %arg1[%c256, %c0_2] : memref<400x128xf32, #tpu.memory_space<vmem>>, vector<128x128xf32>
    %c384 = arith.constant 384 : index
    %c0_3 = arith.constant 0 : index
    %3 = vector.load %arg1[%c384, %c0_3] : memref<400x128xf32, #tpu.memory_space<vmem>>, vector<16x128xf32>
    %c0_4 = arith.constant 0 : index
    %c0_5 = arith.constant 0 : index
    %4 = vector.load %arg2[%c0_4, %c0_5] : memref<264x128xf32, #tpu.memory_space<vmem>>, vector<128x128xf32>
    %c128_6 = arith.constant 128 : index
    %c0_7 = arith.constant 0 : index
    %5 = vector.load %arg2[%c128_6, %c0_7] : memref<264x128xf32, #tpu.memory_space<vmem>>, vector<128x128xf32>
    %c256_8 = arith.constant 256 : index
    %c0_9 = arith.constant 0 : index
    %6 = vector.load %arg2[%c256_8, %c0_9] : memref<264x128xf32, #tpu.memory_space<vmem>>, vector<8x128xf32>
    %cst = arith.constant dense<0.000000e+00> : vector<128x128xf32>
    %7 = tpu.matmul %0, %4, %cst {dimension_numbers = #tpu.dot_dimension_numbers<[1], [0], [0], [1], [0, 0, 1, 1], [], []>} : vector<128x128xf32>, vector<128x128xf32>, vector<128x128xf32> -> vector<128x128xf32>
    %8 = vector.extract_strided_slice %6 {offsets = [0, 0], sizes = [1, 128], strides = [1, 1]} : vector<8x128xf32> to vector<1x128xf32>
    %cst_10 = arith.constant dense<0.000000e+00> : vector<1x128xf32>
    %9 = tpu.matmul %8, %1, %cst_10 {dimension_numbers = #tpu.dot_dimension_numbers<[1], [0], [0], [1], [0, 0, 1, 1], [], []>} : vector<1x128xf32>, vector<128x128xf32>, vector<1x128xf32> -> vector<1x128xf32>
    %10 = vector.extract_strided_slice %7 {offsets = [0, 64], sizes = [128, 1], strides = [1, 1]} : vector<128x128xf32> to vector<128x1xf32>
    %11 = vector.broadcast %10 : vector<128x1xf32> to vector<128x128xf32>
    %12 = vector.broadcast %9 : vector<1x128xf32> to vector<128x128xf32>
    %13 = arith.addf %11, %12 : vector<128x128xf32>
    %cst_11 = arith.constant 0.000000e+00 : f32
    %14 = vector.broadcast %cst_11 : f32 to vector<128x128xf32>
    %15 = arith.cmpf ogt, %13, %14 : vector<128x128xf32>
    %cst_12 = arith.constant 0.00999999977 : f32
    %16 = vector.broadcast %cst_12 : f32 to vector<128x128xf32>
    %17 = arith.mulf %16, %13 : vector<128x128xf32>
    %18 = arith.select %15, %13, %17 : vector<128x128xi1>, vector<128x128xf32>
    %19 = arith.negf %18 : vector<128x128xf32>
    %20 = math.exp %19 : vector<128x128xf32>
    %cst_13 = arith.constant 1.000000e+00 : f32
    %21 = vector.broadcast %cst_13 : f32 to vector<128x128xf32>
    %22 = arith.addf %21, %20 : vector<128x128xf32>
    %23 = arith.divf %21, %22 : vector<128x128xf32>
    %24 = arith.mulf %23, %2 : vector<128x128xf32>
    %cst_14 = arith.constant dense<0.000000e+00> : vector<128x128xf32>
    %25 = tpu.matmul %24, %7, %cst_14 {dimension_numbers = #tpu.dot_dimension_numbers<[1], [0], [0], [1], [0, 0, 1, 1], [], []>} : vector<128x128xf32>, vector<128x128xf32>, vector<128x128xf32> -> vector<128x128xf32>
    %cst_15 = arith.constant dense<0.000000e+00> : vector<16x128xf32>
    %26 = tpu.matmul %3, %25, %cst_15 {dimension_numbers = #tpu.dot_dimension_numbers<[1], [0], [0], [1], [0, 0, 1, 1], [], []>} : vector<16x128xf32>, vector<128x128xf32>, vector<16x128xf32> -> vector<16x128xf32>
    %27 = vector.extract_strided_slice %6 {offsets = [1, 0], sizes = [1, 128], strides = [1, 1]} : vector<8x128xf32> to vector<1x128xf32>
    %28 = vector.extract_strided_slice %6 {offsets = [2, 0], sizes = [1, 128], strides = [1, 1]} : vector<8x128xf32> to vector<1x128xf32>
    %29 = vector.extract_strided_slice %6 {offsets = [3, 0], sizes = [1, 128], strides = [1, 1]} : vector<8x128xf32> to vector<1x128xf32>
    %30 = vector.extract_strided_slice %6 {offsets = [4, 0], sizes = [1, 128], strides = [1, 1]} : vector<8x128xf32> to vector<1x128xf32>
    %31 = vector.extract_strided_slice %6 {offsets = [5, 0], sizes = [1, 128], strides = [1, 1]} : vector<8x128xf32> to vector<1x128xf32>
    %32 = tpu.iota {dimensions = array<i32: 0>} : vector<8x128xi32>
    %c4_i32 = arith.constant 4 : i32
    %33 = vector.broadcast %c4_i32 : i32 to vector<8x128xi32>
    %34 = arith.cmpi slt, %32, %33 : vector<8x128xi32>
    %35 = vector.extract_strided_slice %26 {offsets = [0, 0], sizes = [8, 128], strides = [1, 1]} : vector<16x128xf32> to vector<8x128xf32>
    %36 = vector.extract_strided_slice %35 {offsets = [0, 0], sizes = [4, 128], strides = [1, 1]} : vector<8x128xf32> to vector<4x128xf32>
    %cst_16 = arith.constant dense<0.000000e+00> : vector<128xf32>
    %37 = vector.multi_reduction <add>, %36, %cst_16 [0] : vector<4x128xf32> to vector<128xf32>
    %38 = vector.shape_cast %37 : vector<128xf32> to vector<1x128xf32>
    %cst_17 = arith.constant 4.000000e+00 : f32
    %39 = vector.broadcast %cst_17 : f32 to vector<1x128xf32>
    %40 = arith.divf %38, %39 : vector<1x128xf32>
    %41 = vector.broadcast %40 : vector<1x128xf32> to vector<4x128xf32>
    %42 = arith.subf %36, %41 : vector<4x128xf32>
    %43 = arith.mulf %42, %42 : vector<4x128xf32>
    %cst_18 = arith.constant dense<0.000000e+00> : vector<128xf32>
    %44 = vector.multi_reduction <add>, %43, %cst_18 [0] : vector<4x128xf32> to vector<128xf32>
    %45 = vector.shape_cast %44 : vector<128xf32> to vector<1x128xf32>
    %cst_19 = arith.constant 4.000000e+00 : f32
    %46 = vector.broadcast %cst_19 : f32 to vector<1x128xf32>
    %47 = arith.divf %45, %46 : vector<1x128xf32>
    %48 = vector.broadcast %40 : vector<1x128xf32> to vector<8x128xf32>
    %49 = arith.subf %35, %48 : vector<8x128xf32>
    %cst_20 = arith.constant 9.99999974E-6 : f32
    %50 = vector.broadcast %cst_20 : f32 to vector<1x128xf32>
    %51 = arith.addf %47, %50 : vector<1x128xf32>
    %52 = math.rsqrt %51 : vector<1x128xf32>
    %53 = vector.broadcast %52 : vector<1x128xf32> to vector<8x128xf32>
    %54 = arith.mulf %49, %53 : vector<8x128xf32>
    %55 = vector.broadcast %27 : vector<1x128xf32> to vector<8x128xf32>
    %56 = arith.mulf %54, %55 : vector<8x128xf32>
    %57 = vector.broadcast %28 : vector<1x128xf32> to vector<8x128xf32>
    %58 = arith.addf %56, %57 : vector<8x128xf32>
    %cst_21 = arith.constant 0.000000e+00 : f32
    %59 = vector.broadcast %cst_21 : f32 to vector<8x128xf32>
    %60 = arith.maximumf %58, %59 : vector<8x128xf32>
    %cst_22 = arith.constant dense<0.000000e+00> : vector<8x128xf32>
    %61 = tpu.matmul %60, %5, %cst_22 {dimension_numbers = #tpu.dot_dimension_numbers<[1], [0], [0], [1], [0, 0, 1, 1], [], []>} : vector<8x128xf32>, vector<128x128xf32>, vector<8x128xf32> -> vector<8x128xf32>
    %62 = vector.broadcast %29 : vector<1x128xf32> to vector<8x128xf32>
    %63 = arith.addf %61, %62 : vector<8x128xf32>
    %64 = vector.extract_strided_slice %63 {offsets = [0, 0], sizes = [4, 128], strides = [1, 1]} : vector<8x128xf32> to vector<4x128xf32>
    %cst_23 = arith.constant dense<0.000000e+00> : vector<128xf32>
    %65 = vector.multi_reduction <add>, %64, %cst_23 [0] : vector<4x128xf32> to vector<128xf32>
    %66 = vector.shape_cast %65 : vector<128xf32> to vector<1x128xf32>
    %cst_24 = arith.constant 4.000000e+00 : f32
    %67 = vector.broadcast %cst_24 : f32 to vector<1x128xf32>
    %68 = arith.divf %66, %67 : vector<1x128xf32>
    %69 = vector.broadcast %68 : vector<1x128xf32> to vector<4x128xf32>
    %70 = arith.subf %64, %69 : vector<4x128xf32>
    %71 = arith.mulf %70, %70 : vector<4x128xf32>
    %cst_25 = arith.constant dense<0.000000e+00> : vector<128xf32>
    %72 = vector.multi_reduction <add>, %71, %cst_25 [0] : vector<4x128xf32> to vector<128xf32>
    %73 = vector.shape_cast %72 : vector<128xf32> to vector<1x128xf32>
    %cst_26 = arith.constant 4.000000e+00 : f32
    %74 = vector.broadcast %cst_26 : f32 to vector<1x128xf32>
    %75 = arith.divf %73, %74 : vector<1x128xf32>
    %76 = vector.broadcast %68 : vector<1x128xf32> to vector<8x128xf32>
    %77 = arith.subf %63, %76 : vector<8x128xf32>
    %cst_27 = arith.constant 9.99999974E-6 : f32
    %78 = vector.broadcast %cst_27 : f32 to vector<1x128xf32>
    %79 = arith.addf %75, %78 : vector<1x128xf32>
    %80 = math.rsqrt %79 : vector<1x128xf32>
    %81 = vector.broadcast %80 : vector<1x128xf32> to vector<8x128xf32>
    %82 = arith.mulf %77, %81 : vector<8x128xf32>
    %83 = vector.broadcast %30 : vector<1x128xf32> to vector<8x128xf32>
    %84 = arith.mulf %82, %83 : vector<8x128xf32>
    %85 = vector.broadcast %31 : vector<1x128xf32> to vector<8x128xf32>
    %86 = arith.addf %84, %85 : vector<8x128xf32>
    %cst_28 = arith.constant 0.000000e+00 : f32
    %87 = vector.broadcast %cst_28 : f32 to vector<8x128xf32>
    %88 = arith.maximumf %86, %87 : vector<8x128xf32>
    %cst_29 = arith.constant 0.000000e+00 : f32
    %89 = vector.broadcast %cst_29 : f32 to vector<8x128xf32>
    %90 = arith.select %34, %88, %89 : vector<8x128xi1>, vector<8x128xf32>
    %c0_30 = arith.constant 0 : index
    %c0_31 = arith.constant 0 : index
    %91 = vector.load %arg3[%c0_30, %c0_31] : memref<16x128xf32, #tpu.memory_space<vmem>>, vector<8x128xf32>
    tpu.vector_store %arg3[%c0_30, %c0_31], %90 {strides = array<i32>} : memref<16x128xf32, #tpu.memory_space<vmem>>, vector<8x128xf32>,
    %92 = vector.extract_strided_slice %26 {offsets = [8, 0], sizes = [8, 128], strides = [1, 1]} : vector<16x128xf32> to vector<8x128xf32>
    %93 = vector.extract_strided_slice %92 {offsets = [0, 0], sizes = [4, 128], strides = [1, 1]} : vector<8x128xf32> to vector<4x128xf32>
    %cst_32 = arith.constant dense<0.000000e+00> : vector<128xf32>
    %94 = vector.multi_reduction <add>, %93, %cst_32 [0] : vector<4x128xf32> to vector<128xf32>
    %95 = vector.shape_cast %94 : vector<128xf32> to vector<1x128xf32>
    %cst_33 = arith.constant 4.000000e+00 : f32
    %96 = vector.broadcast %cst_33 : f32 to vector<1x128xf32>
    %97 = arith.divf %95, %96 : vector<1x128xf32>
    %98 = vector.broadcast %97 : vector<1x128xf32> to vector<4x128xf32>
    %99 = arith.subf %93, %98 : vector<4x128xf32>
    %100 = arith.mulf %99, %99 : vector<4x128xf32>
    %cst_34 = arith.constant dense<0.000000e+00> : vector<128xf32>
    %101 = vector.multi_reduction <add>, %100, %cst_34 [0] : vector<4x128xf32> to vector<128xf32>
    %102 = vector.shape_cast %101 : vector<128xf32> to vector<1x128xf32>
    %cst_35 = arith.constant 4.000000e+00 : f32
    %103 = vector.broadcast %cst_35 : f32 to vector<1x128xf32>
    %104 = arith.divf %102, %103 : vector<1x128xf32>
    %105 = vector.broadcast %97 : vector<1x128xf32> to vector<8x128xf32>
    %106 = arith.subf %92, %105 : vector<8x128xf32>
    %cst_36 = arith.constant 9.99999974E-6 : f32
    %107 = vector.broadcast %cst_36 : f32 to vector<1x128xf32>
    %108 = arith.addf %104, %107 : vector<1x128xf32>
    %109 = math.rsqrt %108 : vector<1x128xf32>
    %110 = vector.broadcast %109 : vector<1x128xf32> to vector<8x128xf32>
    %111 = arith.mulf %106, %110 : vector<8x128xf32>
    %112 = vector.broadcast %27 : vector<1x128xf32> to vector<8x128xf32>
    %113 = arith.mulf %111, %112 : vector<8x128xf32>
    %114 = vector.broadcast %28 : vector<1x128xf32> to vector<8x128xf32>
    %115 = arith.addf %113, %114 : vector<8x128xf32>
    %cst_37 = arith.constant 0.000000e+00 : f32
    %116 = vector.broadcast %cst_37 : f32 to vector<8x128xf32>
    %117 = arith.maximumf %115, %116 : vector<8x128xf32>
    %cst_38 = arith.constant dense<0.000000e+00> : vector<8x128xf32>
    %118 = tpu.matmul %117, %5, %cst_38 {dimension_numbers = #tpu.dot_dimension_numbers<[1], [0], [0], [1], [0, 0, 1, 1], [], []>} : vector<8x128xf32>, vector<128x128xf32>, vector<8x128xf32> -> vector<8x128xf32>
    %119 = vector.broadcast %29 : vector<1x128xf32> to vector<8x128xf32>
    %120 = arith.addf %118, %119 : vector<8x128xf32>
    %121 = vector.extract_strided_slice %120 {offsets = [0, 0], sizes = [4, 128], strides = [1, 1]} : vector<8x128xf32> to vector<4x128xf32>
    %cst_39 = arith.constant dense<0.000000e+00> : vector<128xf32>
    %122 = vector.multi_reduction <add>, %121, %cst_39 [0] : vector<4x128xf32> to vector<128xf32>
    %123 = vector.shape_cast %122 : vector<128xf32> to vector<1x128xf32>
    %cst_40 = arith.constant 4.000000e+00 : f32
    %124 = vector.broadcast %cst_40 : f32 to vector<1x128xf32>
    %125 = arith.divf %123, %124 : vector<1x128xf32>
    %126 = vector.broadcast %125 : vector<1x128xf32> to vector<4x128xf32>
    %127 = arith.subf %121, %126 : vector<4x128xf32>
    %128 = arith.mulf %127, %127 : vector<4x128xf32>
    %cst_41 = arith.constant dense<0.000000e+00> : vector<128xf32>
    %129 = vector.multi_reduction <add>, %128, %cst_41 [0] : vector<4x128xf32> to vector<128xf32>
    %130 = vector.shape_cast %129 : vector<128xf32> to vector<1x128xf32>
    %cst_42 = arith.constant 4.000000e+00 : f32
    %131 = vector.broadcast %cst_42 : f32 to vector<1x128xf32>
    %132 = arith.divf %130, %131 : vector<1x128xf32>
    %133 = vector.broadcast %125 : vector<1x128xf32> to vector<8x128xf32>
    %134 = arith.subf %120, %133 : vector<8x128xf32>
    %cst_43 = arith.constant 9.99999974E-6 : f32
    %135 = vector.broadcast %cst_43 : f32 to vector<1x128xf32>
    %136 = arith.addf %132, %135 : vector<1x128xf32>
    %137 = math.rsqrt %136 : vector<1x128xf32>
    %138 = vector.broadcast %137 : vector<1x128xf32> to vector<8x128xf32>
    %139 = arith.mulf %134, %138 : vector<8x128xf32>
    %140 = vector.broadcast %30 : vector<1x128xf32> to vector<8x128xf32>
    %141 = arith.mulf %139, %140 : vector<8x128xf32>
    %142 = vector.broadcast %31 : vector<1x128xf32> to vector<8x128xf32>
    %143 = arith.addf %141, %142 : vector<8x128xf32>
    %cst_44 = arith.constant 0.000000e+00 : f32
    %144 = vector.broadcast %cst_44 : f32 to vector<8x128xf32>
    %145 = arith.maximumf %143, %144 : vector<8x128xf32>
    %cst_45 = arith.constant 0.000000e+00 : f32
    %146 = vector.broadcast %cst_45 : f32 to vector<8x128xf32>
    %147 = arith.select %34, %145, %146 : vector<8x128xi1>, vector<8x128xf32>
    %c8 = arith.constant 8 : index
    %c0_46 = arith.constant 0 : index
    %148 = vector.load %arg3[%c8, %c0_46] : memref<16x128xf32, #tpu.memory_space<vmem>>, vector<8x128xf32>
    tpu.vector_store %arg3[%c8, %c0_46], %147 {strides = array<i32>} : memref<16x128xf32, #tpu.memory_space<vmem>>, vector<8x128xf32>,
    return
  }
  func.func @transform_0(%arg0: i32) -> (i32, i32) {
    %c0_i32 = arith.constant 0 : i32
    %c0_i32_0 = arith.constant 0 : i32
    %c0_i32_1 = arith.constant 0 : i32
    return %c0_i32, %c0_i32_0 : i32, i32
  }
  func.func @transform_1(%arg0: i32) -> (i32, i32) {
    %c0_i32 = arith.constant 0 : i32
    %c0_i32_0 = arith.constant 0 : i32
    %c0_i32_1 = arith.constant 0 : i32
    return %c0_i32, %c0_i32_0 : i32, i32
  }
  func.func @transform_2(%arg0: i32) -> (i32, i32) {
    %c0_i32 = arith.constant 0 : i32
    %c0_i32_0 = arith.constant 0 : i32
    %c0_i32_1 = arith.constant 0 : i32
    return %c0_i32, %c0_i32_0 : i32, i32
  }
}

</mosaic_0001>

<bundles_post_ra>
// kernel: siamese_gcn_train_forward.1
= control target key start
LH: loop header
LB: loop body
LE: loop exit
PB: predicated region body
PF: predicated region fallthrough
CT: control target
= control target key end

     0   :  { %v1706_v3 = vmov 0.0|0.0   ;;  %vm1707_vm0 = vmmov 0   ;;  %v1708_v4 = vmov 0.0   ;;  %s2055_s1 = inlined_call_operand.vmem [shape: f32[264,128], index: 1, kind: input, shape index: {}]   ;;  %s2056_s0 = inlined_call_operand.vmem [shape: f32[400,128], index: 0, kind: input, shape index: {}]   ;;  %s2057_s2 = inlined_call_operand.vmem [shape: f32[16,128], index: 2, kind: output, shape index: {}]  }
   0x1   :  { %v61_v0 = vld [vmem:[%s2055_s1] sm:$0xff]  ;;  %v62_v1 = vld [vmem:[%s2055_s1 + $0x8] sm:$0xff]  ;;  %v63_v2 = vld [vmem:[%s2055_s1 + $0x10] sm:$0xff]  ;;  %1491 = vmatprep.subr.bf16.mxu1 %v1706_v3  ;;  %1295 = vmatprep.mubr.msk.f32.mxu1 %vm1707_vm0, %v1708_v4 }
   0x2   :  { %v1459_v5 = vpack.c.bf16 %v62_v1, %v61_v0  ;;  %v64_v6 = vld [vmem:[%s2055_s1 + $0x18] sm:$0xff]  ;;  %v65_v8 = vld [vmem:[%s2055_s1 + $0x20] sm:$0xff]  ;;  %v66_v9 = vld [vmem:[%s2055_s1 + $0x28] sm:$0xff] }
   0x3   :  { %v1463_v7 = vpack.c.bf16 %v64_v6, %v63_v2  ;;  %v1467_v10 = vpack.c.bf16 %v66_v9, %v65_v8  ;;  %v11_v11 = vld [vmem:[%s2056_s0] sm:$0xff]  ;;  %v67_v12 = vld [vmem:[%s2055_s1 + $0x30] sm:$0xff]  ;;  %v68_v13 = vld [vmem:[%s2055_s1 + $0x38] sm:$0xff] }
   0x4   :  { %1460 = vmatprep.subr.bf16.mxu0 %v1459_v5  ;;  %1239 = vmatprep.mubr.f32.mxu0 %v11_v11  ;;  %v1471_v14 = vpack.c.bf16 %v68_v13, %v67_v12  ;;  %v69_v15 = vld [vmem:[%s2055_s1 + $0x40] sm:$0xff]  ;;  %v70_v16 = vld [vmem:[%s2055_s1 + $0x48] sm:$0xff]  ;;  %v29_v19 = vld [vmem:[%s2056_s0 + $0x90] sm:$0xff] }
   0x5   :  { %1462 = vmatpush3.bf16.msra.mxu0 %v1459_v5  ;;  %v27_v17 = vld [vmem:[%s2056_s0 + $0x80] sm:$0xff]  ;;  %v28_v18 = vld [vmem:[%s2056_s0 + $0x88] sm:$0xff]  ;;  %v30_v20 = vld [vmem:[%s2056_s0 + $0x98] sm:$0xff]  ;;  %v1475_v22 = vpack.c.bf16 %v70_v16, %v69_v15  ;;  %v1709_v5 = vmov 64  }
   0x6   :  { %1464 = vmatprep.subr.bf16.mxu0 %v1463_v7  ;;  %v1492_v21 = vpack.c.bf16 %v28_v18, %v27_v17  ;;  %v71_v23 = vld [vmem:[%s2055_s1 + $0x50] sm:$0xff]  ;;  %v72_v24 = vld [vmem:[%s2055_s1 + $0x58] sm:$0xff]  ;;  %v1495_v25 = vpack.c.bf16 %v30_v20, %v29_v19  ;;  %v31_v26 = vld [vmem:[%s2056_s0 + $0xa0] sm:$0xff]  ;;  %1631 = vset.pattern.permute.xlu0 %v1709_v5 }
   0x7   :  { %v32_v27 = vld [vmem:[%s2056_s0 + $0xa8] sm:$0xff]  ;;  %v1479_v28 = vpack.c.bf16 %v72_v24, %v71_v23  ;;  %v73_v29 = vld [vmem:[%s2055_s1 + $0x60] sm:$0xff]  ;;  %v33_v32 = vld [vmem:[%s2056_s0 + $0xb0] sm:$0xff]  ;;  %1632 = vset.pattern.permute.xlu1 %v1709_v5 }
   0x8   :  { %1493 = vmatpush3.bf16.msra.mxu1 %v1492_v21  ;;  %v74_v30 = vld [vmem:[%s2055_s1 + $0x68] sm:$0xff]  ;;  %v1498_v31 = vpack.c.bf16 %v32_v27, %v31_v26  ;;  %v34_v33 = vld [vmem:[%s2056_s0 + $0xb8] sm:$0xff]  ;;  %v75_v35 = vld [vmem:[%s2055_s1 + $0x70] sm:$0xff] }
   0x9   :  { %1466 = vmatpush3.bf16.msra.mxu0 %v1463_v7  ;;  %1494 = vmatprep.subr.bf16.mxu1 %v1706_v3  ;;  %v1483_v34 = vpack.c.bf16 %v74_v30, %v73_v29  ;;  %v76_v36 = vld [vmem:[%s2055_s1 + $0x78] sm:$0xff]  ;;  %v1501_v37 = vpack.c.bf16 %v34_v33, %v33_v32  ;;  %v35_v38 = vld [vmem:[%s2056_s0 + $0xc0] sm:$0xff]  ;;  %v36_v39 = vld [vmem:[%s2056_s0 + $0xc8] sm:$0xff]  ;;  %v389_v32 = vlaneseq }
   0xa   :  { %1468 = vmatprep.subr.bf16.mxu0 %v1467_v10  ;;  %v1487_v40 = vpack.c.bf16 %v76_v36, %v75_v35  ;;  %v1504_v41 = vpack.c.bf16 %v36_v39, %v35_v38  ;;  %v37_v42 = vld [vmem:[%s2056_s0 + $0xd0] sm:$0xff]  ;;  %v38_v43 = vld [vmem:[%s2056_s0 + $0xd8] sm:$0xff]  ;;  %v39_v45 = vld [vmem:[%s2056_s0 + $0xe0] sm:$0xff] }
   0xb   :  { %v1507_v44 = vpack.c.bf16 %v38_v43, %v37_v42  ;;  %v40_v46 = vld [vmem:[%s2056_s0 + $0xe8] sm:$0xff]  ;;  %v13_v48 = vld [vmem:[%s2056_s0 + $0x10] sm:$0xff]  ;;  %v42_v51 = vld [vmem:[%s2056_s0 + $0xf8] sm:$0xff]  ;;  %v1886_v33 = vshrl.u32 %v389_v32, 7 }
   0xc   :  { %1496 = vmatpush3.bf16.msra.mxu1 %v1495_v25  ;;  %v12_v47 = vld [vmem:[%s2056_s0 + $0x8] sm:$0xff]  ;;  %v1510_v49 = vpack.c.bf16 %v40_v46, %v39_v45  ;;  %v41_v50 = vld [vmem:[%s2056_s0 + $0xf0] sm:$0xff]  ;;  %v14_v52 = vld [vmem:[%s2056_s0 + $0x18] sm:$0xff] }
   0xd   :  { %1470 = vmatpush3.bf16.msra.mxu0 %v1467_v10  ;;  %1497 = vmatprep.subr.bf16.mxu1 %v1706_v3  ;;  %v15_v53 = vld [vmem:[%s2056_s0 + $0x20] sm:$0xff]  ;;  %v1513_v54 = vpack.c.bf16 %v42_v51, %v41_v50  ;;  %v16_v55 = vld [vmem:[%s2056_s0 + $0x28] sm:$0xff]  ;;  %v17_v56 = vld [vmem:[%s2056_s0 + $0x30] sm:$0xff] }
   0xe   :  { %1472 = vmatprep.subr.bf16.mxu0 %v1471_v14  ;;  %v1855_v57 = vld [vmem:[%s2055_s1 + $0x100] sm:$0xff]  ;;  %v18_v58 = vld [vmem:[%s2056_s0 + $0x38] sm:$0xff]  ;;  %v20_v60 = vld [vmem:[%s2056_s0 + $0x48] sm:$0xff] }
   0xf   :  { %v19_v59 = vld [vmem:[%s2056_s0 + $0x40] sm:$0xff]  ;;  %v21_v61 = vld [vmem:[%s2056_s0 + $0x50] sm:$0xff]  ;;  %v22_v62 = vld [vmem:[%s2056_s0 + $0x58] sm:$0xff] }
  0x10   :  { %1499 = vmatpush3.bf16.msra.mxu1 %v1498_v31  ;;  %v23_v63 = vld [vmem:[%s2056_s0 + $0x60] sm:$0xff]  ;;  %v24_v0 = vld [vmem:[%s2056_s0 + $0x68] sm:$0xff]  ;;  %v25_v1 = vld [vmem:[%s2056_s0 + $0x70] sm:$0xff] }
  0x11   :  { %1474 = vmatpush3.bf16.msra.mxu0 %v1471_v14  ;;  %1500 = vmatprep.subr.bf16.mxu1 %v1706_v3  ;;  %v26_v2 = vld [vmem:[%s2056_s0 + $0x78] sm:$0xff] }
  0x12   :  { %1476 = vmatprep.subr.bf16.mxu0 %v1475_v22 }
  0x14   :  { %1502 = vmatpush3.bf16.msra.mxu1 %v1501_v37 }
  0x15   :  { %1478 = vmatpush3.bf16.msra.mxu0 %v1475_v22  ;;  %1503 = vmatprep.subr.bf16.mxu1 %v1706_v3 }
  0x16   :  { %1480 = vmatprep.subr.bf16.mxu0 %v1479_v28 }
  0x18   :  { %1505 = vmatpush3.bf16.msra.mxu1 %v1504_v41 }
  0x19   :  { %1482 = vmatpush3.bf16.msra.mxu0 %v1479_v28  ;;  %1506 = vmatprep.subr.bf16.mxu1 %v1706_v3 }
  0x1a   :  { %1484 = vmatprep.subr.bf16.mxu0 %v1483_v34 }
  0x1c   :  { %1508 = vmatpush3.bf16.msra.mxu1 %v1507_v44 }
  0x1d   :  { %1486 = vmatpush3.bf16.msra.mxu0 %v1483_v34  ;;  %1509 = vmatprep.subr.bf16.mxu1 %v1706_v3  ;;  %v391_v34 = vsub.s32 0, %v1886_v33 }
  0x1e   :  { %1488 = vmatprep.subr.bf16.mxu0 %v1487_v40 }
  0x20   :  { %1511 = vmatpush3.bf16.msra.mxu1 %v1510_v49 }
  0x21   :  { %1490 = vmatpush3.bf16.msra.mxu0 %v1487_v40  ;;  %1512 = vmatprep.subr.bf16.mxu1 %v1706_v3 }
  0x24   :  { %1240 = vmatmul.mubr.f32.vlgmr.msra.gmra.mrb[0].mxu0 %v12_v47  ;;  %1514 = vmatpush3.bf16.msra.mxu1 %v1513_v54 }
  0x25   :  { %1242 = vmatprep.mubr.f32.mxu0 %v13_v48 }
  0x27   :  { %1296 = vmatmul.mubr.f32.vlgmr.msra.gmra.mrb[0].mxu1 %v1855_v57 }
  0x28   :  { %1243 = vmatmul.mubr.f32.gmra.mrb[2].mxu0 %v14_v52 }
  0x29   :  { %1245 = vmatprep.mubr.f32.mxu0 %v15_v53 }
  0x2c   :  { %1246 = vmatmul.mubr.f32.gmra.mrb[4].mxu0 %v16_v55 }
  0x2d   :  { %1248 = vmatprep.mubr.f32.mxu0 %v17_v56 }
  0x30   :  { %1249 = vmatmul.mubr.f32.gmra.mrb[6].mxu0 %v18_v58 }
  0x31   :  { %1251 = vmatprep.mubr.f32.mxu0 %v19_v59 }
  0x34   :  { %1252 = vmatmul.mubr.f32.gmra.mrb[8].mxu0 %v20_v60 }
  0x35   :  { %1254 = vmatprep.mubr.f32.mxu0 %v21_v61 }
  0x38   :  { %1255 = vmatmul.mubr.f32.gmra.mrb[10].mxu0 %v22_v62 }
  0x39   :  { %1257 = vmatprep.mubr.f32.mxu0 %v23_v63 }
  0x3c   :  { %1258 = vmatmul.mubr.f32.gmra.mrb[12].mxu0 %v24_v0 }
  0x3d   :  { %1260 = vmatprep.mubr.f32.mxu0 %v25_v1 }
  0x40   :  { %1261 = vmatmul.mubr.f32.gmra.mrb[14].mxu0 %v26_v2 }
  0xf7   :  { %v1241_v6 = vpop.f32.mrb[0].mxu0 }
  0xf8   :  { %v160_v7 = vpop.f32.mrb[1].mxu0 }
  0xf9   :  { %v1515_v8 = vpack.c.bf16 %v1241_v6, %v160_v7  ;;  %311 = vperm.xlu0 %1631, %v160_v7  }
  0xfa   :  { %v305_v15 = vpop.f32.mrb[0].mxu1 }
  0xfb   :  { %v1244_v9 = vpop.f32.mrb[2].mxu0  ;;  %1516 = vmatprep.subr.bf16.mxu0 %v1515_v8  ;;  %v1297_v16 = vpop.f32.mrb[1].mxu1  ;;  %v1889_v35 = vrot.slane %v305_v15, %v391_v34 }
  0xfc   :  { %v170_v10 = vpop.f32.mrb[3].mxu0  ;;  %1518 = vmatpush3.bf16.msra.mxu0 %v1515_v8 }
  0xfd   :  { %v1519_v11 = vpack.c.bf16 %v1244_v9, %v170_v10  ;;  %316 = vperm.xlu0 %1631, %v1241_v6   ;;  %321 = vperm.xlu1 %1632, %v170_v10  }
  0xff   :  { %v1247_v12 = vpop.f32.mrb[4].mxu0  ;;  %1520 = vmatprep.subr.bf16.mxu0 %v1519_v11 }
 0x100   :  { %v180_v13 = vpop.f32.mrb[5].mxu0  ;;  %1522 = vmatpush3.bf16.msra.mxu0 %v1519_v11 }
 0x101   :  { %v1523_v14 = vpack.c.bf16 %v1247_v12, %v180_v13  ;;  %326 = vperm.xlu1 %1632, %v1244_v9   ;;  %331 = vperm.xlu0 %1631, %v180_v13  }
 0x103   :  { %v1250_v17 = vpop.f32.mrb[6].mxu0  ;;  %1524 = vmatprep.subr.bf16.mxu0 %v1523_v14 }
 0x104   :  { %v190_v18 = vpop.f32.mrb[7].mxu0  ;;  %1526 = vmatpush3.bf16.msra.mxu0 %v1523_v14 }
 0x105   :  { %v1527_v19 = vpack.c.bf16 %v1250_v17, %v190_v18  ;;  %336 = vperm.xlu1 %1632, %v1247_v12   ;;  %341 = vperm.xlu0 %1631, %v190_v18  }
 0x107   :  { %v1253_v20 = vpop.f32.mrb[8].mxu0  ;;  %1528 = vmatprep.subr.bf16.mxu0 %v1527_v19 }
 0x108   :  { %v200_v21 = vpop.f32.mrb[9].mxu0  ;;  %1530 = vmatpush3.bf16.msra.mxu0 %v1527_v19 }
 0x109   :  { %v1531_v22 = vpack.c.bf16 %v1253_v20, %v200_v21  ;;  %346 = vperm.xlu1 %1632, %v1250_v17   ;;  %351 = vperm.xlu0 %1631, %v200_v21  }
 0x10b   :  { %v1256_v23 = vpop.f32.mrb[10].mxu0  ;;  %1532 = vmatprep.subr.bf16.mxu0 %v1531_v22 }
 0x10c   :  { %v210_v24 = vpop.f32.mrb[11].mxu0  ;;  %1534 = vmatpush3.bf16.msra.mxu0 %v1531_v22 }
 0x10d   :  { %v1535_v25 = vpack.c.bf16 %v1256_v23, %v210_v24  ;;  %356 = vperm.xlu1 %1632, %v1253_v20   ;;  %361 = vperm.xlu0 %1631, %v210_v24  }
 0x10f   :  { %v1259_v26 = vpop.f32.mrb[12].mxu0  ;;  %1536 = vmatprep.subr.bf16.mxu0 %v1535_v25 }
 0x110   :  { %v220_v27 = vpop.f32.mrb[13].mxu0  ;;  %1538 = vmatpush3.bf16.msra.mxu0 %v1535_v25 }
 0x111   :  { %v1539_v28 = vpack.c.bf16 %v1259_v26, %v220_v27  ;;  %366 = vperm.xlu1 %1632, %v1256_v23   ;;  %371 = vperm.xlu0 %1631, %v220_v27  }
 0x113   :  { %v1262_v29 = vpop.f32.mrb[14].mxu0  ;;  %1540 = vmatprep.subr.bf16.mxu0 %v1539_v28 }
 0x114   :  { %v230_v30 = vpop.f32.mrb[15].mxu0  ;;  %1542 = vmatpush3.bf16.msra.mxu0 %v1539_v28 }
 0x115   :  { %v1543_v31 = vpack.c.bf16 %v1262_v29, %v230_v30  ;;  %376 = vperm.xlu1 %1632, %v1259_v26   ;;  %381 = vperm.xlu0 %1631, %v230_v30  }
 0x117   :  { %1544 = vmatprep.subr.bf16.mxu0 %v1543_v31 }
 0x118   :  { %1546 = vmatpush3.bf16.msra.mxu0 %v1543_v31 }
 0x119   :  { %386 = vperm.xlu1 %1632, %v1262_v29   ;;  %1579 = vmatprep.subr.bf16.mxu0 %v1706_v3 }
 0x178   :  { %v312_v36 = vpop.permute.xlu0 %311 }
 0x179   :  { %v393_v37 = vadd.f32 %v1889_v35, %v312_v36 }
 0x17b   :  { %vm409_vm1 = vcmp.gt.f32.partialorder %v393_v37, 0.0  ;;  %v425_v38 = vmul.f32 0.01, %v393_v37 }
 0x17c   :  { %v317_v39 = vpop.permute.xlu0 %316  ;;  %v322_v40 = vpop.permute.xlu1 %321 }
 0x17d   :  { %v441_v41 = vsel %vm409_vm1, %v393_v37, %v425_v38  ;;  %v394_v42 = vadd.f32 %v1889_v35, %v317_v39  ;;  %v395_v43 = vadd.f32 %v1889_v35, %v322_v40 }
 0x17e   :  { %v1058_v44 = vmul.f32 -1.442695, %v441_v41 }
 0x17f   :  { %vm410_vm2 = vcmp.gt.f32.partialorder %v394_v42, 0.0  ;;  %v426_v45 = vmul.f32 0.01, %v394_v42  ;;  %vm411_vm3 = vcmp.gt.f32.partialorder %v395_v43, 0.0  ;;  %v427_v46 = vmul.f32 0.01, %v395_v43 }
 0x180   :  { %1633 = vpow2.f32 %v1058_v44  ;;  %v327_v47 = vpop.permute.xlu1 %326  ;;  %v332_v48 = vpop.permute.xlu0 %331 }
 0x181   :  { %v442_v49 = vsel %vm410_vm2, %v394_v42, %v426_v45  ;;  %v443_v50 = vsel %vm411_vm3, %v395_v43, %v427_v46  ;;  %v396_v51 = vadd.f32 %v1889_v35, %v327_v47  ;;  %v397_v52 = vadd.f32 %v1889_v35, %v332_v48 }
 0x182   :  { %v1059_v53 = vmul.f32 -1.442695, %v442_v49  ;;  %v1060_v54 = vmul.f32 -1.442695, %v443_v50  ;;  %vm791_vm2 = vcmp.lt.s32.totalorder %v1886_v33, 4 }
 0x183   :  { %vm412_vm4 = vcmp.gt.f32.partialorder %v396_v51, 0.0  ;;  %v428_v55 = vmul.f32 0.01, %v396_v51  ;;  %vm413_vm5 = vcmp.gt.f32.partialorder %v397_v52, 0.0  ;;  %v429_v56 = vmul.f32 0.01, %v397_v52 }
 0x184   :  { %1635 = vpow2.f32 %v1059_v53  ;;  %v337_v58 = vpop.permute.xlu1 %336  ;;  %v342_v59 = vpop.permute.xlu0 %341 }
 0x185   :  { %1637 = vpow2.f32 %v1060_v54  ;;  %v444_v60 = vsel %vm412_vm4, %v396_v51, %v428_v55  ;;  %v445_v61 = vsel %vm413_vm5, %v397_v52, %v429_v56  ;;  %v398_v62 = vadd.f32 %v1889_v35, %v337_v58 }
 0x186   :  { %v1061_v63 = vmul.f32 -1.442695, %v444_v60  ;;  %v1062_v0 = vmul.f32 -1.442695, %v445_v61  ;;  %v399_v1 = vadd.f32 %v1889_v35, %v342_v59  ;;  %v43_v59 = vld [vmem:[%s2056_s0 + $0x100] sm:$0xff] }
 0x187   :  { %vm414_vm6 = vcmp.gt.f32.partialorder %v398_v62, 0.0  ;;  %v430_v2 = vmul.f32 0.01, %v398_v62 }
 0x188   :  { %1639 = vpow2.f32 %v1061_v63  ;;  %vm415_vm7 = vcmp.gt.f32.partialorder %v399_v1, 0.0  ;;  %v431_v5 = vmul.f32 0.01, %v399_v1  ;;  %v347_v6 = vpop.permute.xlu1 %346  ;;  %v352_v7 = vpop.permute.xlu0 %351 }
 0x189   :  { %1641 = vpow2.f32 %v1062_v0  ;;  %v446_v8 = vsel %vm414_vm6, %v398_v62, %v430_v2  ;;  %v400_v9 = vadd.f32 %v1889_v35, %v347_v6  ;;  %v401_v10 = vadd.f32 %v1889_v35, %v352_v7 }
 0x18a   :  { %v1634_v11 = vpop.eup %1633  ;;  %v1063_v12 = vmul.f32 -1.442695, %v446_v8  ;;  %v447_v13 = vsel %vm415_vm7, %v399_v1, %v431_v5  ;;  %v44_v8 = vld [vmem:[%s2056_s0 + $0x108] sm:$0xff] }
 0x18b   :  { %v505_v14 = vadd.f32 1.0, %v1634_v11  ;;  %v1064_v15 = vmul.f32 -1.442695, %v447_v13  ;;  %vm416_vm8 = vcmp.gt.f32.partialorder %v400_v9, 0.0  ;;  %v432_v16 = vmul.f32 0.01, %v400_v9 }
 0x18c   :  { %1643 = vpow2.f32 %v1063_v12  ;;  %vm417_vm9 = vcmp.gt.f32.partialorder %v401_v10, 0.0  ;;  %v433_v17 = vmul.f32 0.01, %v401_v10  ;;  %v357_v18 = vpop.permute.xlu1 %356  ;;  %v362_v19 = vpop.permute.xlu0 %361 }
 0x18d   :  { %1645 = vrcp.f32 %v505_v14  ;;  %v448_v20 = vsel %vm416_vm8, %v400_v9, %v432_v16  ;;  %v402_v21 = vadd.f32 %v1889_v35, %v357_v18  ;;  %v403_v22 = vadd.f32 %v1889_v35, %v362_v19  ;;  %v45_v9 = vld [vmem:[%s2056_s0 + $0x110] sm:$0xff]  ;;  %v46_v19 = vld [vmem:[%s2056_s0 + $0x118] sm:$0xff] }
 0x18e   :  { %v1636_v23 = vpop.eup %1635  ;;  %1647 = vpow2.f32 %v1064_v15  ;;  %v1065_v24 = vmul.f32 -1.442695, %v448_v20  ;;  %v449_v25 = vsel %vm417_vm9, %v401_v10, %v433_v17 }
 0x18f   :  { %v1638_v26 = vpop.eup %1637  ;;  %v506_v27 = vadd.f32 1.0, %v1636_v23  ;;  %v1066_v28 = vmul.f32 -1.442695, %v449_v25  ;;  %vm418_vm10 = vcmp.gt.f32.partialorder %v402_v21, 0.0  ;;  %v434_v29 = vmul.f32 0.01, %v402_v21 }
 0x190   :  { %v507_v30 = vadd.f32 1.0, %v1638_v26  ;;  %1649 = vpow2.f32 %v1065_v24  ;;  %vm419_vm11 = vcmp.gt.f32.partialorder %v403_v22, 0.0  ;;  %v435_v31 = vmul.f32 0.01, %v403_v22  ;;  %v367_v32 = vpop.permute.xlu1 %366  ;;  %v372_v34 = vpop.permute.xlu0 %371  ;;  %v47_v23 = vld [vmem:[%s2056_s0 + $0x120] sm:$0xff] }
 0x191   :  { %1651 = vrcp.f32 %v506_v27  ;;  %v450_v36 = vsel %vm418_vm10, %v402_v21, %v434_v29  ;;  %v404_v37 = vadd.f32 %v1889_v35, %v367_v32  ;;  %v405_v38 = vadd.f32 %v1889_v35, %v372_v34 }
 0x192   :  { %v1640_v39 = vpop.eup %1639  ;;  %1653 = vrcp.f32 %v507_v30  ;;  %v1067_v40 = vmul.f32 -1.442695, %v450_v36  ;;  %v451_v41 = vsel %vm419_vm11, %v403_v22, %v435_v31  ;;  %v48_v31 = vld [vmem:[%s2056_s0 + $0x128] sm:$0xff]  ;;  %v49_v36 = vld [vmem:[%s2056_s0 + $0x130] sm:$0xff] }
 0x193   :  { %v1642_v42 = vpop.eup %1641  ;;  %v508_v43 = vadd.f32 1.0, %v1640_v39  ;;  %1655 = vpow2.f32 %v1066_v28  ;;  %v1068_v44 = vmul.f32 -1.442695, %v451_v41  ;;  %vm420_vm12 = vcmp.gt.f32.partialorder %v404_v37, 0.0  ;;  %v50_v41 = vld [vmem:[%s2056_s0 + $0x138] sm:$0xff] }
 0x194   :  { %v509_v45 = vadd.f32 1.0, %v1642_v42  ;;  %1657 = vpow2.f32 %v1067_v40  ;;  %v436_v46 = vmul.f32 0.01, %v404_v37  ;;  %vm421_vm13 = vcmp.gt.f32.partialorder %v405_v38, 0.0  ;;  %v377_v47 = vpop.permute.xlu1 %376  ;;  %v382_v48 = vpop.permute.xlu0 %381 }
 0x195   :  { %1659 = vrcp.f32 %v508_v43  ;;  %v437_v49 = vmul.f32 0.01, %v405_v38  ;;  %v406_v50 = vadd.f32 %v1889_v35, %v377_v47  ;;  %v407_v51 = vadd.f32 %v1889_v35, %v382_v48  ;;  %v51_v48 = vld [vmem:[%s2056_s0 + $0x140] sm:$0xff] }
 0x196   :  { %v1644_v52 = vpop.eup %1643  ;;  %1661 = vrcp.f32 %v509_v45  ;;  %v452_v53 = vsel %vm420_vm12, %v404_v37, %v436_v46 }
 0x197   :  { %v1646_v54 = vpop.eup %1645  ;;  %v510_v55 = vadd.f32 1.0, %v1644_v52  ;;  %1663 = vpow2.f32 %v1068_v44  ;;  %v1069_v56 = vmul.f32 -1.442695, %v452_v53  ;;  %v453_v58 = vsel %vm421_vm13, %v405_v38, %v437_v49 }
 0x198   :  { %v1648_v60 = vpop.eup %1647  ;;  %v1070_v61 = vmul.f32 -1.442695, %v453_v58  ;;  %vm422_vm14 = vcmp.gt.f32.partialorder %v406_v50, 0.0  ;;  %v438_v62 = vmul.f32 0.01, %v406_v50  ;;  %vm423_vm15 = vcmp.gt.f32.partialorder %v407_v51, 0.0  ;;  %v387_v63 = vpop.permute.xlu1 %386 }
 0x199   :  { %1665 = vrcp.f32 %v510_v55  ;;  %v511_v0 = vadd.f32 1.0, %v1648_v60  ;;  %v439_v1 = vmul.f32 0.01, %v407_v51  ;;  %v408_v2 = vadd.f32 %v1889_v35, %v387_v63  ;;  %v54_v63 = vld [vmem:[%s2056_s0 + $0x158] sm:$0xff] }
 0x19a   :  { %v1650_v5 = vpop.eup %1649  ;;  %1667 = vpow2.f32 %v1069_v56  ;;  %v454_v6 = vsel %vm422_vm14, %v406_v50, %v438_v62  ;;  %v553_v7 = vmul.f32 %v1646_v54, %v43_v59  ;;  %v53_v59 = vld [vmem:[%s2056_s0 + $0x150] sm:$0xff] }
 0x19b   :  { %v1652_v10 = vpop.eup %1651  ;;  %1669 = vrcp.f32 %v511_v0  ;;  %v512_v11 = vadd.f32 1.0, %v1650_v5  ;;  %v1071_v12 = vmul.f32 -1.442695, %v454_v6  ;;  %v455_v13 = vsel %vm423_vm15, %v407_v51, %v439_v1  ;;  %v52_v51 = vld [vmem:[%s2056_s0 + $0x148] sm:$0xff]  ;;  %v55_v1 = vld [vmem:[%s2056_s0 + $0x160] sm:$0xff] }
 0x19c   :  { %v1654_v14 = vpop.eup %1653  ;;  %1671 = vpow2.f32 %v1070_v61  ;;  %v1072_v35 = vmul.f32 -1.442695, %v455_v13  ;;  %vm424_vm1 = vcmp.gt.f32.partialorder %v408_v2, 0.0  ;;  %v440_v15 = vmul.f32 0.01, %v408_v2  ;;  %1330 = vmatprep.mubr.f32.mxu0 %v553_v7  ;;  %v56_v6 = vld [vmem:[%s2056_s0 + $0x168] sm:$0xff] }
 0x19d   :  { %v1656_v16 = vpop.eup %1655  ;;  %1673 = vrcp.f32 %v512_v11  ;;  %v554_v17 = vmul.f32 %v1652_v10, %v44_v8  ;;  %v555_v18 = vmul.f32 %v1654_v14, %v45_v9  ;;  %v57_v8 = vld [vmem:[%s2056_s0 + $0x170] sm:$0xff]  ;;  %v58_v13 = vld [vmem:[%s2056_s0 + $0x178] sm:$0xff] }
 0x19e   :  { %v1658_v20 = vpop.eup %1657  ;;  %v513_v21 = vadd.f32 1.0, %v1656_v16  ;;  %1675 = vpow2.f32 %v1071_v12  ;;  %v456_v22 = vsel %vm424_vm1, %v408_v2, %v440_v15  ;;  %v59_v15 = vld [vmem:[%s2056_s0 + $0x180] sm:$0xff] }
 0x19f   :  { %v1660_v24 = vpop.eup %1659  ;;  %v514_v25 = vadd.f32 1.0, %v1658_v20  ;;  %1677 = vpow2.f32 %v1072_v35  ;;  %v1073_v26 = vmul.f32 -1.442695, %v456_v22  ;;  %1331 = vmatmul.mubr.f32.vlgmr.msra.gmra.mrb[16].mxu0 %v554_v17  ;;  %1386 = vmatprep.mubr.f32.mxu1 %v59_v15 }
 0x1a0   :  { %v1662_v27 = vpop.eup %1661  ;;  %1679 = vrcp.f32 %v513_v21  ;;  %1333 = vmatprep.mubr.f32.mxu0 %v555_v18  ;;  %v556_v28 = vmul.f32 %v1660_v24, %v46_v19 }
 0x1a1   :  { %v1664_v29 = vpop.eup %1663  ;;  %1681 = vrcp.f32 %v514_v25  ;;  %v557_v30 = vmul.f32 %v1662_v27, %v47_v23 }
 0x1a2   :  { %v515_v32 = vadd.f32 1.0, %v1664_v29  ;;  %1683 = vpow2.f32 %v1073_v26 }
 0x1a3   :  { %v1666_v34 = vpop.eup %1665  ;;  %1334 = vmatmul.mubr.f32.gmra.mrb[18].mxu0 %v556_v28 }
 0x1a4   :  { %v1668_v37 = vpop.eup %1667  ;;  %1685 = vrcp.f32 %v515_v32  ;;  %1336 = vmatprep.mubr.f32.mxu0 %v557_v30  ;;  %v558_v38 = vmul.f32 %v1666_v34, %v48_v31 }
 0x1a5   :  { %v1670_v39 = vpop.eup %1669  ;;  %v516_v40 = vadd.f32 1.0, %v1668_v37 }
 0x1a6   :  { %v1672_v42 = vpop.eup %1671  ;;  %v559_v43 = vmul.f32 %v1670_v39, %v49_v36 }
 0x1a7   :  { %v1674_v44 = vpop.eup %1673  ;;  %1687 = vrcp.f32 %v516_v40  ;;  %v517_v45 = vadd.f32 1.0, %v1672_v42  ;;  %1337 = vmatmul.mubr.f32.gmra.mrb[20].mxu0 %v558_v38  ;;  %v60_v42 = vld [vmem:[%s2056_s0 + $0x188] sm:$0xff] }
 0x1a8   :  { %v1676_v46 = vpop.eup %1675  ;;  %1339 = vmatprep.mubr.f32.mxu0 %v559_v43  ;;  %v560_v47 = vmul.f32 %v1674_v44, %v50_v41  ;;  %v77_v43 = vld [vmem:[%s2055_s1 + $0x80] sm:$0xff]  ;;  %v78_v44 = vld [vmem:[%s2055_s1 + $0x88] sm:$0xff] }
 0x1a9   :  { %v1678_v49 = vpop.eup %1677  ;;  %1689 = vrcp.f32 %v517_v45  ;;  %v518_v50 = vadd.f32 1.0, %v1676_v46  ;;  %v1580_v45 = vpack.c.bf16 %v78_v44, %v77_v43  ;;  %v79_v46 = vld [vmem:[%s2055_s1 + $0x90] sm:$0xff] }
 0x1aa   :  { %v1680_v52 = vpop.eup %1679  ;;  %v519_v53 = vadd.f32 1.0, %v1678_v49  ;;  %v82_v49 = vld [vmem:[%s2055_s1 + $0xa8] sm:$0xff] }
 0x1ab   :  { %v1682_v54 = vpop.eup %1681  ;;  %1691 = vrcp.f32 %v518_v50  ;;  %1340 = vmatmul.mubr.f32.gmra.mrb[22].mxu0 %v560_v47  ;;  %v561_v55 = vmul.f32 %v1680_v52, %v51_v48  ;;  %v81_v48 = vld [vmem:[%s2055_s1 + $0xa0] sm:$0xff]  ;;  %v84_v52 = vld [vmem:[%s2055_s1 + $0xb8] sm:$0xff] }
 0x1ac   :  { %v1684_v56 = vpop.eup %1683  ;;  %1693 = vrcp.f32 %v519_v53  ;;  %v562_v58 = vmul.f32 %v1682_v54, %v52_v51  ;;  %1581 = vmatpush3.bf16.msra.mxu0 %v1580_v45  ;;  %v1586_v50 = vpack.c.bf16 %v82_v49, %v81_v48  ;;  %v83_v51 = vld [vmem:[%s2055_s1 + $0xb0] sm:$0xff]  ;;  %v85_v54 = vld [vmem:[%s2055_s1 + $0xc0] sm:$0xff] }
 0x1ad   :  { %v520_v60 = vadd.f32 1.0, %v1684_v56  ;;  %1342 = vmatprep.mubr.f32.mxu0 %v561_v55  ;;  %1582 = vmatprep.subr.bf16.mxu0 %v1706_v3  ;;  %v1589_v53 = vpack.c.bf16 %v84_v52, %v83_v51  ;;  %v86_v55 = vld [vmem:[%s2055_s1 + $0xc8] sm:$0xff] }
 0x1ae   :  { %v1686_v61 = vpop.eup %1685  ;;  %v1592_v56 = vpack.c.bf16 %v86_v55, %v85_v54 }
 0x1af   :  { %1695 = vrcp.f32 %v520_v60  ;;  %1343 = vmatmul.mubr.f32.gmra.mrb[24].mxu0 %v562_v58  ;;  %v563_v62 = vmul.f32 %v1686_v61, %v53_v59  ;;  %v87_v58 = vld [vmem:[%s2055_s1 + $0xd0] sm:$0xff]  ;;  %v88_v59 = vld [vmem:[%s2055_s1 + $0xd8] sm:$0xff]  ;;  %v89_v61 = vld [vmem:[%s2055_s1 + $0xe0] sm:$0xff] }
 0x1b0   :  { %v1595_v60 = vpack.c.bf16 %v88_v59, %v87_v58  ;;  %v828_v59 = vsub.s32 3, %v1886_v33 }
 0x1b1   :  { %v1688_v0 = vpop.eup %1687  ;;  %1345 = vmatprep.mubr.f32.mxu0 %v563_v62  ;;  %v90_v62 = vld [vmem:[%s2055_s1 + $0xe8] sm:$0xff] }
 0x1b2   :  { %v564_v2 = vmul.f32 %v1688_v0, %v54_v63  ;;  %v1598_v63 = vpack.c.bf16 %v90_v62, %v89_v61  ;;  %v91_v0 = vld [vmem:[%s2055_s1 + $0xf0] sm:$0xff] }
 0x1b3   :  { %v1690_v5 = vpop.eup %1689 }
 0x1b4   :  { %1346 = vmatmul.mubr.f32.gmra.mrb[26].mxu0 %v564_v2  ;;  %v565_v7 = vmul.f32 %v1690_v5, %v55_v1  ;;  %v92_v1 = vld [vmem:[%s2055_s1 + $0xf8] sm:$0xff] }
 0x1b5   :  { %v1692_v9 = vpop.eup %1691  ;;  %v1601_v2 = vpack.c.bf16 %v92_v1, %v91_v0 }
 0x1b6   :  { %v1694_v10 = vpop.eup %1693  ;;  %1348 = vmatprep.mubr.f32.mxu0 %v565_v7  ;;  %v566_v11 = vmul.f32 %v1692_v9, %v56_v6 }
 0x1b7   :  { %v567_v12 = vmul.f32 %v1694_v10, %v57_v8 }
 0x1b8   :  { %1349 = vmatmul.mubr.f32.gmra.mrb[28].mxu0 %v566_v11 }
 0x1b9   :  { %v1696_v14 = vpop.eup %1695  ;;  %1351 = vmatprep.mubr.f32.mxu0 %v567_v12 }
 0x1ba   :  { %v568_v35 = vmul.f32 %v1696_v14, %v58_v13 }
 0x1bc   :  { %1352 = vmatmul.mubr.f32.gmra.mrb[30].mxu0 %v568_v35 }
 0x1bd   :  { %1421 = vmatprep.mubr.msk.f32.mxu0 %vm1707_vm0, %v1708_v4 }
 0x272   :  { %v1332_v16 = vpop.f32.mrb[16].mxu0 }
 0x273   :  { %v635_v17 = vpop.f32.mrb[17].mxu0 }
 0x274   :  { %v1547_v18 = vpack.c.bf16 %v1332_v16, %v635_v17 }
 0x276   :  { %v1335_v19 = vpop.f32.mrb[18].mxu0  ;;  %1548 = vmatprep.subr.bf16.mxu1 %v1547_v18 }
 0x277   :  { %v645_v20 = vpop.f32.mrb[19].mxu0  ;;  %1550 = vmatpush3.bf16.msra.mxu1 %v1547_v18 }
 0x278   :  { %v1551_v21 = vpack.c.bf16 %v1335_v19, %v645_v20 }
 0x27a   :  { %v1338_v22 = vpop.f32.mrb[20].mxu0  ;;  %1552 = vmatprep.subr.bf16.mxu1 %v1551_v21 }
 0x27b   :  { %v655_v23 = vpop.f32.mrb[21].mxu0  ;;  %1554 = vmatpush3.bf16.msra.mxu1 %v1551_v21 }
 0x27c   :  { %v1555_v24 = vpack.c.bf16 %v1338_v22, %v655_v23 }
 0x27e   :  { %v1341_v25 = vpop.f32.mrb[22].mxu0  ;;  %1556 = vmatprep.subr.bf16.mxu1 %v1555_v24 }
 0x27f   :  { %v665_v26 = vpop.f32.mrb[23].mxu0  ;;  %1558 = vmatpush3.bf16.msra.mxu1 %v1555_v24 }
 0x280   :  { %v1559_v27 = vpack.c.bf16 %v1341_v25, %v665_v26 }
 0x282   :  { %v1344_v28 = vpop.f32.mrb[24].mxu0  ;;  %1560 = vmatprep.subr.bf16.mxu1 %v1559_v27 }
 0x283   :  { %v675_v29 = vpop.f32.mrb[25].mxu0  ;;  %1562 = vmatpush3.bf16.msra.mxu1 %v1559_v27 }
 0x284   :  { %v1563_v30 = vpack.c.bf16 %v1344_v28, %v675_v29 }
 0x286   :  { %1564 = vmatprep.subr.bf16.mxu1 %v1563_v30 }
 0x287   :  { %v1347_v31 = vpop.f32.mrb[26].mxu0  ;;  %1566 = vmatpush3.bf16.msra.mxu1 %v1563_v30 }
 0x288   :  { %v685_v32 = vpop.f32.mrb[27].mxu0 }
 0x289   :  { %v1567_v34 = vpack.c.bf16 %v1347_v31, %v685_v32 }
 0x28b   :  { %v1350_v36 = vpop.f32.mrb[28].mxu0  ;;  %1568 = vmatprep.subr.bf16.mxu1 %v1567_v34 }
 0x28c   :  { %v695_v37 = vpop.f32.mrb[29].mxu0  ;;  %1570 = vmatpush3.bf16.msra.mxu1 %v1567_v34 }
 0x28d   :  { %v1571_v38 = vpack.c.bf16 %v1350_v36, %v695_v37 }
 0x28f   :  { %v1353_v39 = vpop.f32.mrb[30].mxu0  ;;  %1572 = vmatprep.subr.bf16.mxu1 %v1571_v38 }
 0x290   :  { %v705_v40 = vpop.f32.mrb[31].mxu0  ;;  %1574 = vmatpush3.bf16.msra.mxu1 %v1571_v38 }
 0x291   :  { %v1575_v41 = vpack.c.bf16 %v1353_v39, %v705_v40 }
 0x293   :  { %1576 = vmatprep.subr.bf16.mxu1 %v1575_v41 }
 0x294   :  { %1578 = vmatpush3.bf16.msra.mxu1 %v1575_v41 }
 0x295   :  { %1603 = vmatprep.subr.bf16.mxu1 %v1706_v3 }
 0x297   :  { %1387 = vmatmul.mubr.f32.vlgmr.msra.gmra.mrb[2].mxu1 %v60_v42 }
 0x298   :  { %1456 = vmatprep.mubr.msk.f32.mxu1 %vm1707_vm0, %v1708_v4  ;;  %1605 = vmatpush3.bf16.msra.mxu1 %v1580_v45  ;;  %v80_v4 = vld [vmem:[%s2055_s1 + $0x98] sm:$0xff]  ;;  %vm792_vm0 = vcmask 1043456   ;;  %v817_v45 = vsub.s32 1, %v1886_v33 }
 0x299   :  { %1606 = vmatprep.subr.bf16.mxu1 %v1706_v3  ;;  %v1583_v47 = vpack.c.bf16 %v80_v4, %v79_v46  ;;  %v822_v46 = vsub.s32 2, %v1886_v33 }
 0x29a   :  { %v818_v4 = vrot.slane %v1855_v57, %v817_v45 }
 0x29b   :  { %1584 = vmatpush3.bf16.msra.mxu0 %v1583_v47  ;;  %v823_v49 = vrot.slane %v1855_v57, %v822_v46 }
 0x29c   :  { %1608 = vmatpush3.bf16.msra.mxu1 %v1583_v47  ;;  %1585 = vmatprep.subr.bf16.mxu0 %v1706_v3 }
 0x29d   :  { %1609 = vmatprep.subr.bf16.mxu1 %v1706_v3 }
 0x29f   :  { %1587 = vmatpush3.bf16.msra.mxu0 %v1586_v50 }
 0x2a0   :  { %1611 = vmatpush3.bf16.msra.mxu1 %v1586_v50  ;;  %1588 = vmatprep.subr.bf16.mxu0 %v1706_v3 }
 0x2a1   :  { %1612 = vmatprep.subr.bf16.mxu1 %v1706_v3 }
 0x2a3   :  { %1590 = vmatpush3.bf16.msra.mxu0 %v1589_v53 }
 0x2a4   :  { %1614 = vmatpush3.bf16.msra.mxu1 %v1589_v53  ;;  %1591 = vmatprep.subr.bf16.mxu0 %v1706_v3 }
 0x2a5   :  { %1615 = vmatprep.subr.bf16.mxu1 %v1706_v3 }
 0x2a7   :  { %1593 = vmatpush3.bf16.msra.mxu0 %v1592_v56 }
 0x2a8   :  { %1617 = vmatpush3.bf16.msra.mxu1 %v1592_v56  ;;  %1594 = vmatprep.subr.bf16.mxu0 %v1706_v3 }
 0x2a9   :  { %1618 = vmatprep.subr.bf16.mxu1 %v1706_v3 }
 0x2ab   :  { %1596 = vmatpush3.bf16.msra.mxu0 %v1595_v60 }
 0x2ac   :  { %1620 = vmatpush3.bf16.msra.mxu1 %v1595_v60  ;;  %1597 = vmatprep.subr.bf16.mxu0 %v1706_v3  ;;  %v829_v60 = vrot.slane %v1855_v57, %v828_v59 }
 0x2ad   :  { %1621 = vmatprep.subr.bf16.mxu1 %v1706_v3 }
 0x2af   :  { %1599 = vmatpush3.bf16.msra.mxu0 %v1598_v63 }
 0x2b0   :  { %1623 = vmatpush3.bf16.msra.mxu1 %v1598_v63  ;;  %1600 = vmatprep.subr.bf16.mxu0 %v1706_v3 }
 0x2b1   :  { %1624 = vmatprep.subr.bf16.mxu1 %v1706_v3 }
 0x2b3   :  { %1602 = vmatpush3.bf16.msra.mxu0 %v1601_v2 }
 0x2b4   :  { %1626 = vmatpush3.bf16.msra.mxu1 %v1601_v2 }
 0x36a   :  { %v1388_v5 = vpop.f32.mrb[2].mxu1 }
 0x36b   :  { %v934_v6 = vsel %vm792_vm0, %v1388_v5, 0.0  ;;  %v780_v7 = vpop.f32.mrb[3].mxu1 }
 0x36c   :  { %v935_v8 = vrot.slane %v934_v6, 4  ;;  %v793_v9 = vsel %vm792_vm0, %v780_v7, 0.0 }
 0x36d   :  { %v794_v3 = vrot.slane %v793_v9, 4 }
 0x36e   :  { %v936_v10 = vadd.f32 %v935_v8, %v934_v6 }
 0x36f   :  { %v795_v11 = vadd.f32 %v794_v3, %v793_v9 }
 0x370   :  { %v937_v12 = vrot.slane %v936_v10, 2 }
 0x371   :  { %v796_v13 = vrot.slane %v795_v11, 2 }
 0x372   :  { %v938_v14 = vadd.f32 %v937_v12, %v936_v10 }
 0x373   :  { %v797_v35 = vadd.f32 %v796_v13, %v795_v11 }
 0x374   :  { %v939_v15 = vrot.slane %v938_v14, 1 }
 0x375   :  { %v798_v16 = vrot.slane %v797_v35, 1 }
 0x376   :  { %v940_v17 = vadd.f32 %v939_v15, %v938_v14 }
 0x377   :  { %v799_v18 = vadd.f32 %v798_v16, %v797_v35 }
 0x378   :  { %v941_v19 = vmul.f32 0.25, %v940_v17 }
 0x379   :  { %v801_v20 = vmul.f32 0.25, %v799_v18 }
 0x37a   :  { %v942_v21 = vsub.f32 %v1388_v5, %v941_v19 }
 0x37b   :  { %v802_v22 = vsub.f32 %v780_v7, %v801_v20 }
 0x37c   :  { %v943_v23 = vmul.f32 %v942_v21, %v942_v21 }
 0x37d   :  { %v803_v24 = vmul.f32 %v802_v22, %v802_v22 }
 0x37e   :  { %v944_v25 = vsel %vm792_vm0, %v943_v23, 0.0 }
 0x37f   :  { %v945_v26 = vrot.slane %v944_v25, 4  ;;  %v804_v27 = vsel %vm792_vm0, %v803_v24, 0.0 }
 0x380   :  { %v805_v28 = vrot.slane %v804_v27, 4 }
 0x381   :  { %v946_v29 = vadd.f32 %v945_v26, %v944_v25 }
 0x382   :  { %v806_v30 = vadd.f32 %v805_v28, %v804_v27 }
 0x383   :  { %v947_v31 = vrot.slane %v946_v29, 2 }
 0x384   :  { %v807_v32 = vrot.slane %v806_v30, 2 }
 0x385   :  { %v948_v34 = vadd.f32 %v947_v31, %v946_v29 }
 0x386   :  { %v808_v36 = vadd.f32 %v807_v32, %v806_v30 }
 0x387   :  { %v949_v37 = vrot.slane %v948_v34, 1 }
 0x388   :  { %v809_v38 = vrot.slane %v808_v36, 1 }
 0x389   :  { %v950_v39 = vadd.f32 %v949_v37, %v948_v34 }
 0x38a   :  { %v810_v40 = vadd.f32 %v809_v38, %v808_v36 }
 0x38b   :  { %v951_v41 = vmul.f32 0.25, %v950_v39 }
 0x38c   :  { %v811_v42 = vmul.f32 0.25, %v810_v40 }
 0x38d   :  { %v952_v43 = vadd.f32 1e-05, %v951_v41 }
 0x38e   :  { %v812_v44 = vadd.f32 1e-05, %v811_v42  ;;  %v923_v42 = vsub.s32 4, %v1886_v33 }
 0x38f   :  { %1697 = vrsqrt.f32 %v952_v43  ;;  %v928_v43 = vsub.s32 5, %v1886_v33 }
 0x390   :  { %1699 = vrsqrt.f32 %v812_v44  ;;  %v1705_v44 = vld [vmem:[%s2055_s1 + $0x100] sm:$0xff] }
 0x391   :  { %v924_v45 = vrot.slane %v1705_v44, %v923_v42 }
 0x399   :  { %v1698_v47 = vpop.eup %1697 }
 0x39a   :  { %v1700_v48 = vpop.eup %1699  ;;  %v954_v50 = vmul.f32 %v1698_v47, %v942_v21  ;;  %v929_v47 = vrot.slane %v1705_v44, %v928_v43 }
 0x39b   :  { %v814_v51 = vmul.f32 %v1700_v48, %v802_v22 }
 0x39c   :  { %v955_v52 = vmul.f32 %v954_v50, %v818_v4 }
 0x39d   :  { %v819_v53 = vmul.f32 %v818_v4, %v814_v51 }
 0x39e   :  { %v956_v54 = vadd.f32 %v955_v52, %v823_v49 }
 0x39f   :  { %v824_v55 = vadd.f32 %v823_v49, %v819_v53 }
 0x3a0   :  { %v957_v56 = vmax.f32 %v956_v54, 0.0 }
 0x3a1   :  { %v825_v58 = vmax.f32 %v824_v55, 0.0 }
 0x3a2   :  { %1457 = vmatmul.mubr.f32.vlgmr.msra.gmra.mrb[4].mxu1 %v957_v56 }
 0x3a3   :  { %1422 = vmatmul.mubr.f32.vlgmr.msra.gmra.mrb[32].mxu0 %v825_v58 }
 0x475   :  { %v1024_v61 = vpop.f32.mrb[4].mxu1 }
 0x476   :  { %v1025_v62 = vadd.f32 %v1024_v61, %v829_v60  ;;  %v896_v63 = vpop.f32.mrb[32].mxu0  ;;  %v1458_v0 = vpop.f32.mrb[5].mxu1 }
 0x477   :  { %v897_v1 = vadd.f32 %v896_v63, %v829_v60  ;;  %v1423_v2 = vpop.f32.mrb[33].mxu0 }
 0x478   :  { %v1028_v5 = vsel %vm792_vm0, %v1025_v62, 0.0 }
 0x479   :  { %v1029_v6 = vrot.slane %v1028_v5, 4  ;;  %v900_v7 = vsel %vm792_vm0, %v897_v1, 0.0 }
 0x47a   :  { %v901_v8 = vrot.slane %v900_v7, 4 }
 0x47b   :  { %v1030_v9 = vadd.f32 %v1029_v6, %v1028_v5 }
 0x47c   :  { %v902_v3 = vadd.f32 %v901_v8, %v900_v7 }
 0x47d   :  { %v1031_v10 = vrot.slane %v1030_v9, 2 }
 0x47e   :  { %v903_v11 = vrot.slane %v902_v3, 2 }
 0x47f   :  { %v1032_v12 = vadd.f32 %v1031_v10, %v1030_v9 }
 0x480   :  { %v904_v13 = vadd.f32 %v903_v11, %v902_v3 }
 0x481   :  { %v1033_v14 = vrot.slane %v1032_v12, 1 }
 0x482   :  { %v905_v57 = vrot.slane %v904_v13, 1 }
 0x483   :  { %v1034_v35 = vadd.f32 %v1033_v14, %v1032_v12 }
 0x484   :  { %v906_v15 = vadd.f32 %v905_v57, %v904_v13 }
 0x485   :  { %v1035_v16 = vmul.f32 0.25, %v1034_v35 }
 0x486   :  { %v907_v17 = vmul.f32 0.25, %v906_v15 }
 0x487   :  { %v1036_v18 = vsub.f32 %v1025_v62, %v1035_v16 }
 0x488   :  { %v908_v19 = vsub.f32 %v897_v1, %v907_v17 }
 0x489   :  { %v1037_v20 = vmul.f32 %v1036_v18, %v1036_v18 }
 0x48a   :  { %v909_v21 = vmul.f32 %v908_v19, %v908_v19 }
 0x48b   :  { %v1038_v22 = vsel %vm792_vm0, %v1037_v20, 0.0 }
 0x48c   :  { %v1039_v23 = vrot.slane %v1038_v22, 4  ;;  %v910_v24 = vsel %vm792_vm0, %v909_v21, 0.0 }
 0x48d   :  { %v911_v25 = vrot.slane %v910_v24, 4 }
 0x48e   :  { %v1040_v26 = vadd.f32 %v1039_v23, %v1038_v22 }
 0x48f   :  { %v912_v27 = vadd.f32 %v911_v25, %v910_v24 }
 0x490   :  { %v1041_v28 = vrot.slane %v1040_v26, 2 }
 0x491   :  { %v913_v29 = vrot.slane %v912_v27, 2 }
 0x492   :  { %v1042_v30 = vadd.f32 %v1041_v28, %v1040_v26 }
 0x493   :  { %v914_v31 = vadd.f32 %v913_v29, %v912_v27 }
 0x494   :  { %v1043_v32 = vrot.slane %v1042_v30, 1 }
 0x495   :  { %v915_v34 = vrot.slane %v914_v31, 1 }
 0x496   :  { %v1044_v36 = vadd.f32 %v1043_v32, %v1042_v30 }
 0x497   :  { %v916_v37 = vadd.f32 %v915_v34, %v914_v31 }
 0x498   :  { %v1045_v38 = vmul.f32 0.25, %v1044_v36 }
 0x499   :  { %v917_v39 = vmul.f32 0.25, %v916_v37 }
 0x49a   :  { %v1046_v40 = vadd.f32 1e-05, %v1045_v38 }
 0x49b   :  { %v918_v41 = vadd.f32 1e-05, %v917_v39 }
 0x49c   :  { %1701 = vrsqrt.f32 %v1046_v40 }
 0x49d   :  { %1703 = vrsqrt.f32 %v918_v41 }
 0x4a6   :  { %v1702_v46 = vpop.eup %1701 }
 0x4a7   :  { %v1704_v4 = vpop.eup %1703  ;;  %v1048_v48 = vmul.f32 %v1702_v46, %v1036_v18 }
 0x4a8   :  { %v920_v49 = vmul.f32 %v1704_v4, %v908_v19 }
 0x4a9   :  { %v1049_v50 = vmul.f32 %v1048_v48, %v924_v45 }
 0x4aa   :  { %v925_v51 = vmul.f32 %v924_v45, %v920_v49 }
 0x4ab   :  { %v1050_v52 = vadd.f32 %v1049_v50, %v929_v47 }
 0x4ac   :  { %v930_v53 = vadd.f32 %v929_v47, %v925_v51 }
 0x4ad   :  { %v1051_v54 = vmax.f32 %v1050_v52, 0.0 }
 0x4ae   :  { %v931_v55 = vmax.f32 %v930_v53, 0.0 }
 0x4af   :  { %v1052_v56 = vsel %vm791_vm2, %v1051_v54, 0.0 }
 0x4b0   :  { %1053 = vst [vmem:[%s2057_s2 + $0x8] sm:$0xff] %v1052_v56  ;;  %v932_v58 = vsel %vm791_vm2, %v931_v55, 0.0 }
 0x4b1   :  { %933 = vst [vmem:[%s2057_s2] sm:$0xff] %v932_v58 }

</bundles_post_ra>
